<compile_context>
chip_gen: v7x
topology: tpu7x:2x2x1
jax: 0.10.0
libtpu: 0.0.40
codegen_flags: <defaults>
</compile_context>

<pallas_src>
import jax
import jax.numpy as jnp
from jax.experimental import pallas as pl
from jax.experimental.pallas import tpu as pltpu


def head_kernel(h_ref, mask_ref, w_ref, b_ref, out_ref, sum_emb_ref):
    # h_ref:    [TB, TS, H]   last_hidden_state tile (native dtype: f32 or bf16)
    # mask_ref: [TB, S_pad]   attention_mask, resident across the S grid axis
    # w_ref:    [1, H]        fc weight (torch nn.Linear(H, 1) layout), resident
    # b_ref:    [1, 1]        fc bias, SMEM scalar
    # out_ref:  [TB, 1]       output (resident across the S grid axis)
    # scratch:  sum_emb_ref [TB, H] f32 accumulator
    s_idx = pl.program_id(1)
    ts = h_ref.shape[1]                      # static seq-tile length

    @pl.when(s_idx == 0)
    def _init():
        sum_emb_ref[...] = jnp.zeros_like(sum_emb_ref)

    h = h_ref[...]                           # [TB, TS, H], native dtype
    if ts == mask_ref.shape[1]:
        m = mask_ref[...]                    # single S tile: whole resident mask
    else:
        start = pl.multiple_of(s_idx * ts, 128)
        m = mask_ref[:, pl.ds(start, ts)]    # [TB, TS] slice of the resident mask

    # NOTE: cast to h.dtype is exact for 0/1 integer masks (attention_mask semantics).
    m_h = m.astype(h.dtype)[:, None, :]      # [TB, 1, TS]

    # Mask-multiply + S-reduction as one batched MXU contraction, f32 accumulate.
    # TODO(synk): on v7x audit whether the M=1 weight-load pushes contend with the
    # ~0.6 cyc/vreg DMA roofline; switch to a VPU multiply + sublane add if the vex slot binds.
    partial = jax.lax.dot_general(
        m_h, h,
        dimension_numbers=(((2,), (1,)), ((0,), (0,))),
        preferred_element_type=jnp.float32)  # [TB, 1, H]
    sum_emb_ref[...] += partial[:, 0, :]

    @pl.when(s_idx == pl.num_programs(1) - 1)
    def _finalize():
        # Denominator computed once per batch tile from the resident mask.
        denom = jnp.sum(mask_ref[...].astype(jnp.float32), axis=1, keepdims=True)
        denom = jnp.maximum(denom, 1e-9)                    # torch.clamp(min=1e-9)
        mean = sum_emb_ref[...] / denom                     # [TB, H]
        # Degenerate N=1 projection: VPU multiply + lane reduce (skip a 1-lane MXU dot).
        logits = jnp.sum(mean * w_ref[...].astype(jnp.float32),
                         axis=-1, keepdims=True)            # [TB, 1]
        out_ref[...] = (logits + b_ref[0, 0]).astype(out_ref.dtype)


def _tpu_info():
    """(vmem_capacity_bytes, tensorcores_per_chip) with generation-aware fallbacks."""
    vmem = None
    try:
        info = pltpu.get_tpu_info()
        vmem = int(getattr(info, "vmem_capacity_bytes", 0)) or None
    except Exception:
        vmem = None
    kind = ""
    try:
        kind = jax.devices()[0].device_kind.lower()
    except Exception:
        pass
    is_v7 = "v7" in kind
    if vmem is None:
        if ("v5" in kind) or ("v6" in kind):
            vmem = 128 * 1024 * 1024
        else:
            vmem = 64 * 1024 * 1024          # conservative (v7x-like) if truly unknown
    return int(vmem), (2 if is_v7 else 1)


def _choose_tiles(B, S, H, h_itemsize, vmem_cap, num_cores):
    """Pick (TB, TS, S_pad) so each streamed h block is as large as the VMEM budget allows."""
    headroom = 8 * 1024 * 1024
    # Per h buffer: ~(cap - headroom)/2.5 accounts for double-buffered h, the small mask
    # buffers, weights and the f32 accumulator scratch.
    budget_h = max(4 * 1024 * 1024, int((vmem_cap - headroom) / 2.5))
    target = 8 * 1024 * 1024                 # aim for >= 8 MiB per streamed block

    def block_bytes(tb, s_len):
        return tb * s_len * H * h_itemsize

    if B % 8 == 0:
        tb = 8
        # Grow TB only while the full-S slab is below target and fits the budget, and (on
        # multi-TC chips) the batch axis keeps >= 2 tiles for cross-core sharding.
        while (B % (tb * 2) == 0
               and (num_cores < 2 or B // (tb * 2) >= 2)
               and block_bytes(tb, S) < target
               and block_bytes(tb * 2, S) <= budget_h):
            tb *= 2
    else:
        tb = B

    if block_bytes(tb, S) <= budget_h:
        ts, s_pad = S, S                     # whole sequence fits: single S step
    else:
        per_row = tb * H * h_itemsize
        ts = max(128, (budget_h // per_row) // 128 * 128)
        s_pad = -(-S // ts) * ts             # zero-pad S up to a multiple of TS
    return tb, ts, s_pad


def custom_model_head(last_hidden_state, attention_mask, fc_w, fc_b,
                      *, tile_b=None, tile_s=None):
    """Masked mean pooling over S followed by Linear(H, 1).

    last_hidden_state: [B, S, H] (f32 or bf16; streamed in its native dtype)
    attention_mask:    [B, S]    (0/1 int)
    fc_w:              [1, H]    (torch nn.Linear(H, 1) weight layout)
    fc_b:              [1, 1]
    Returns [B, 1] float32.
    """
    B, S, H = last_hidden_state.shape
    h_item = jnp.dtype(last_hidden_state.dtype).itemsize
    m_item = jnp.dtype(attention_mask.dtype).itemsize

    vmem_cap, num_cores = _tpu_info()
    tb_def, ts_def, s_pad_def = _choose_tiles(B, S, H, h_item, vmem_cap, num_cores)

    TB = tile_b if tile_b is not None else tb_def
    if tile_s is not None:
        TS = tile_s
        s_pad = S if TS == S else (-(-S // TS) * TS)
    else:
        TS, s_pad = ts_def, s_pad_def
    assert B % TB == 0, (B, TB)
    assert TS == s_pad or TS % 128 == 0, (S, TS)

    if s_pad != S:
        pad = s_pad - S
        last_hidden_state = jnp.pad(last_hidden_state, ((0, 0), (0, pad), (0, 0)))
        attention_mask = jnp.pad(attention_mask, ((0, 0), (0, pad)))

    fc_w = fc_w.reshape(1, H)
    fc_b = jnp.asarray(fc_b, dtype=jnp.float32).reshape(1, 1)

    grid = (B // TB, s_pad // TS)

    est = (2 * TB * TS * H * h_item          # double-buffered h tiles
           + 2 * TB * s_pad * m_item         # resident mask (2 buffers allocated)
           + TB * H * 4 + H * 4              # f32 accumulator scratch + weights
           + (2 << 20))                      # out / bias / slack
    vmem_limit = int(min(vmem_cap - (4 << 20), max(32 << 20, int(est * 1.2))))

    cost = pl.CostEstimate(
        flops=2 * B * s_pad * H + 3 * B * H + B * s_pad,
        transcendentals=0,
        bytes_accessed=(B * s_pad * H * h_item + B * s_pad * m_item
                        + H * 4 + 4 + B * 4),
    )

    return pl.pallas_call(
        head_kernel,
        out_shape=jax.ShapeDtypeStruct((B, 1), jnp.float32),
        grid_spec=pltpu.PrefetchScalarGridSpec(
            num_scalar_prefetch=0,
            grid=grid,
            in_specs=[
                pl.BlockSpec((TB, TS, H), lambda b, s: (b, s, 0)),      # h tile (streamed)
                pl.BlockSpec((TB, s_pad), lambda b, s: (b, 0)),         # mask (resident)
                pl.BlockSpec((1, H), lambda b, s: (0, 0)),              # fc weight (resident)
                pl.BlockSpec(memory_space=pltpu.MemorySpace.SMEM),      # fc bias scalar
            ],
            out_specs=pl.BlockSpec((TB, 1), lambda b, s: (b, 0)),
            scratch_shapes=[pltpu.VMEM((TB, H), jnp.float32)],
        ),
        compiler_params=pltpu.CompilerParams(
            dimension_semantics=("parallel", "arbitrary"),
            vmem_limit_bytes=vmem_limit,
        ),
        cost_estimate=cost,
    )(last_hidden_state, attention_mask, fc_w, fc_b)


def reference_head(last_hidden_state, attention_mask, fc_w, fc_b):
    h = last_hidden_state.astype(jnp.float32)
    m = attention_mask.astype(jnp.float32)[:, :, None]
    s = jnp.sum(h * m, axis=1)
    d = jnp.maximum(jnp.sum(m, axis=1), 1e-9)
    mean = s / d
    return jnp.sum(mean * fc_w.astype(jnp.float32), axis=-1, keepdims=True) + fc_b


if __name__ == "__main__":
    key = jax.random.PRNGKey(0)
    k_h, k_w, k_h2, k_h3, k_w3 = jax.random.split(key, 5)
    initializer_range = 0.02

    # --- Test 1: toy shapes matching the module head (B=2, S=8, H=32), f32, single step ---
    B, S, H = 2, 8, 32
    last_hidden_state = jax.random.normal(k_h, (B, S, H), dtype=jnp.float32)
    attention_mask = jnp.array(
        [[1, 1, 1, 1, 1, 1, 1, 1],
         [1, 1, 1, 1, 1, 0, 0, 0]], dtype=jnp.int32)
    # fc = nn.Linear(H, 1): weight ~ N(0, initializer_range), bias = 0 (torch [1, H] layout).
    fc_w = jax.random.normal(k_w, (1, H), dtype=jnp.float32) * initializer_range
    fc_b = jnp.zeros((1, 1), dtype=jnp.float32)

    out = jax.block_until_ready(
        custom_model_head(last_hidden_state, attention_mask, fc_w, fc_b))
    ref = reference_head(last_hidden_state, attention_mask, fc_w, fc_b)
    assert out.shape == (B, 1)
    assert jnp.allclose(out, ref, atol=1e-5, rtol=1e-5)

    # --- Test 2: bf16 activations, ragged S (zero-pad path) + explicit S tiling ---
    B2, S2, H2 = 8, 300, 128
    h2 = jax.random.normal(k_h2, (B2, S2, H2), dtype=jnp.float32).astype(jnp.bfloat16)
    lens = jnp.arange(1, B2 + 1, dtype=jnp.int32) * (S2 // B2)
    mask2 = (jnp.arange(S2, dtype=jnp.int32)[None, :] < lens[:, None]).astype(jnp.int32)
    fc_w2 = jax.random.normal(k_w, (1, H2), dtype=jnp.float32) * initializer_range
    fc_b2 = jnp.full((1, 1), 0.25, dtype=jnp.float32)

    out2 = jax.block_until_ready(
        custom_model_head(h2, mask2, fc_w2, fc_b2, tile_b=8, tile_s=128))  # grid (1, 3)
    ref2 = reference_head(h2, mask2, fc_w2, fc_b2)
    assert out2.shape == (B2, 1)
    assert jnp.allclose(out2, ref2, atol=1e-2, rtol=1e-2)

    # --- Test 3: auto tile chooser (multiple batch tiles on multi-core chips) ---
    B3, S3, H3 = 16, 256, 128
    h3 = jax.random.normal(k_h3, (B3, S3, H3), dtype=jnp.float32)
    mask3 = (jnp.arange(S3, dtype=jnp.int32)[None, :]
             < jnp.full((B3, 1), 200, dtype=jnp.int32)).astype(jnp.int32)
    fc_w3 = jax.random.normal(k_w3, (1, H3), dtype=jnp.float32) * initializer_range
    fc_b3 = jnp.zeros((1, 1), dtype=jnp.float32)

    out3 = jax.block_until_ready(custom_model_head(h3, mask3, fc_w3, fc_b3))
    ref3 = reference_head(h3, mask3, fc_w3, fc_b3)
    assert out3.shape == (B3, 1)
    assert jnp.allclose(out3, ref3, atol=1e-4, rtol=1e-4)

    print("KERNEL_OK")
</pallas_src>

<mosaic_0001>
module attributes {stable_mosaic.version = 11 : i64} {
  func.func @head_kernel(%arg0: i32, %arg1: i32, %arg2: memref<2x8x32xf32, #tpu.memory_space<vmem>>, %arg3: memref<2x8xi32, #tpu.memory_space<vmem>>, %arg4: memref<1x32xf32, #tpu.memory_space<vmem>>, %arg5: memref<1x1xf32, #tpu.memory_space<smem>>, %arg6: memref<2x1xf32, #tpu.memory_space<vmem>>, %arg7: memref<2x32xf32, #tpu.memory_space<vmem>>) attributes {dimension_semantics = [#tpu.dimension_semantics<parallel>, #tpu.dimension_semantics<arbitrary>], iteration_bounds = array<i64: 1, 1>, scalar_prefetch = 0 : i64, scratch_operands = 1 : i64, tpu.core_type = #tpu.core_type<tc>, window_params = [{transform_indices = @transform_0, window_bounds = array<i64: 2, 8, 32>}, {transform_indices = @transform_1, window_bounds = array<i64: 2, 8>}, {pipeline_mode = #tpu.pipeline_mode<synchronous>, transform_indices = @transform_2, window_bounds = array<i64: 1, 32>}, {transform_indices = @transform_3, window_bounds = array<i64: 1, 1>}, {transform_indices = @transform_4, window_bounds = array<i64: 2, 1>}]} {
    %c0_i32 = arith.constant 0 : i32
    %0 = arith.cmpi eq, %arg1, %c0_i32 : i32
    %1 = arith.extui %0 : i1 to i32
    %c0_i32_0 = arith.constant 0 : i32
    %2 = arith.cmpi ne, %1, %c0_i32_0 : i32
    scf.if %2 {
      %cst_11 = arith.constant 0.000000e+00 : f32
      %15 = vector.broadcast %cst_11 : f32 to vector<2x32xf32>
      %c0_12 = arith.constant 0 : index
      %c0_13 = arith.constant 0 : index
      %16 = vector.load %arg7[%c0_12, %c0_13] : memref<2x32xf32, #tpu.memory_space<vmem>>, vector<2x32xf32>
      tpu.vector_store %arg7[%c0_12, %c0_13], %15 {strides = array<i32>} : memref<2x32xf32, #tpu.memory_space<vmem>>, vector<2x32xf32>,
    } else {
    }
    %c0 = arith.constant 0 : index
    %c0_1 = arith.constant 0 : index
    %c0_2 = arith.constant 0 : index
    %3 = vector.load %arg2[%c0, %c0_1, %c0_2] : memref<2x8x32xf32, #tpu.memory_space<vmem>>, vector<2x8x32xf32>
    %c0_3 = arith.constant 0 : index
    %c0_4 = arith.constant 0 : index
    %4 = vector.load %arg3[%c0_3, %c0_4] : memref<2x8xi32, #tpu.memory_space<vmem>>, vector<2x8xi32>
    %5 = arith.sitofp %4 : vector<2x8xi32> to vector<2x8xf32>
    %6 = vector.shape_cast %5 : vector<2x8xf32> to vector<2x1x8xf32>
    %cst = arith.constant dense<0.000000e+00> : vector<2x1x32xf32>
    %7 = tpu.matmul %6, %3, %cst {dimension_numbers = #tpu.dot_dimension_numbers<[2], [1], [1], [2], [0, 0, 0, 1, 1, 2], [0], [0]>} : vector<2x1x8xf32>, vector<2x8x32xf32>, vector<2x1x32xf32> -> vector<2x1x32xf32>
    %c0_5 = arith.constant 0 : index
    %c0_6 = arith.constant 0 : index
    %8 = vector.load %arg7[%c0_5, %c0_6] : memref<2x32xf32, #tpu.memory_space<vmem>>, vector<2x32xf32>
    %9 = vector.shape_cast %7 : vector<2x1x32xf32> to vector<2x32xf32>
    %10 = arith.addf %8, %9 : vector<2x32xf32>
    %c0_7 = arith.constant 0 : index
    %c0_8 = arith.constant 0 : index
    %11 = vector.load %arg7[%c0_7, %c0_8] : memref<2x32xf32, #tpu.memory_space<vmem>>, vector<2x32xf32>
    tpu.vector_store %arg7[%c0_7, %c0_8], %10 {strides = array<i32>} : memref<2x32xf32, #tpu.memory_space<vmem>>, vector<2x32xf32>,
    %c0_i32_9 = arith.constant 0 : i32
    %12 = arith.cmpi eq, %arg1, %c0_i32_9 : i32
    %13 = arith.extui %12 : i1 to i32
    %c0_i32_10 = arith.constant 0 : i32
    %14 = arith.cmpi ne, %13, %c0_i32_10 : i32
    scf.if %14 {
      %c0_11 = arith.constant 0 : index
      %c0_12 = arith.constant 0 : index
      %15 = vector.load %arg3[%c0_11, %c0_12] : memref<2x8xi32, #tpu.memory_space<vmem>>, vector<2x8xi32>
      %16 = arith.sitofp %15 : vector<2x8xi32> to vector<2x8xf32>
      %cst_13 = arith.constant dense<0.000000e+00> : vector<2xf32>
      %17 = vector.multi_reduction <add>, %16, %cst_13 [1] : vector<2x8xf32> to vector<2xf32>
      %18 = vector.shape_cast %17 : vector<2xf32> to vector<2x1xf32>
      %cst_14 = arith.constant 9.99999971E-10 : f32
      %19 = vector.broadcast %cst_14 : f32 to vector<2x1xf32>
      %20 = arith.maximumf %18, %19 : vector<2x1xf32>
      %c0_15 = arith.constant 0 : index
      %c0_16 = arith.constant 0 : index
      %21 = vector.load %arg7[%c0_15, %c0_16] : memref<2x32xf32, #tpu.memory_space<vmem>>, vector<2x32xf32>
      %22 = vector.broadcast %20 : vector<2x1xf32> to vector<2x32xf32>
      %23 = arith.divf %21, %22 : vector<2x32xf32>
      %c0_17 = arith.constant 0 : index
      %c0_18 = arith.constant 0 : index
      %24 = vector.load %arg4[%c0_17, %c0_18] : memref<1x32xf32, #tpu.memory_space<vmem>>, vector<1x32xf32>
      %25 = vector.broadcast %24 : vector<1x32xf32> to vector<2x32xf32>
      %26 = arith.mulf %23, %25 : vector<2x32xf32>
      %cst_19 = arith.constant dense<0.000000e+00> : vector<2xf32>
      %27 = vector.multi_reduction <add>, %26, %cst_19 [1] : vector<2x32xf32> to vector<2xf32>
      %28 = vector.shape_cast %27 : vector<2xf32> to vector<2x1xf32>
      %c0_20 = arith.constant 0 : index
      %c0_21 = arith.constant 0 : index
      %29 = memref.load %arg5[%c0_20, %c0_21] : memref<1x1xf32, #tpu.memory_space<smem>>
      %30 = vector.broadcast %29 : f32 to vector<2x1xf32>
      %31 = arith.addf %28, %30 : vector<2x1xf32>
      %c0_22 = arith.constant 0 : index
      %c0_23 = arith.constant 0 : index
      %32 = vector.load %arg6[%c0_22, %c0_23] : memref<2x1xf32, #tpu.memory_space<vmem>>, vector<2x1xf32>
      tpu.vector_store %arg6[%c0_22, %c0_23], %31 {strides = array<i32>} : memref<2x1xf32, #tpu.memory_space<vmem>>, vector<2x1xf32>,
    } else {
    }
    return
  }
  func.func @transform_0(%arg0: i32, %arg1: i32) -> (i32, i32, i32) {
    %c0_i32 = arith.constant 0 : i32
    %c0_i32_0 = arith.constant 0 : i32
    return %arg0, %arg1, %c0_i32 : i32, i32, i32
  }
  func.func @transform_1(%arg0: i32, %arg1: i32) -> (i32, i32) {
    %c0_i32 = arith.constant 0 : i32
    %c0_i32_0 = arith.constant 0 : i32
    return %arg0, %c0_i32 : i32, i32
  }
  func.func @transform_2(%arg0: i32, %arg1: i32) -> (i32, i32) {
    %c0_i32 = arith.constant 0 : i32
    %c0_i32_0 = arith.constant 0 : i32
    %c0_i32_1 = arith.constant 0 : i32
    return %c0_i32, %c0_i32_0 : i32, i32
  }
  func.func @transform_3(%arg0: i32, %arg1: i32) -> (i32, i32) {
    %c0_i32 = arith.constant 0 : i32
    %c0_i32_0 = arith.constant 0 : i32
    %c0_i32_1 = arith.constant 0 : i32
    return %c0_i32, %c0_i32_0 : i32, i32
  }
  func.func @transform_4(%arg0: i32, %arg1: i32) -> (i32, i32) {
    %c0_i32 = arith.constant 0 : i32
    %c0_i32_0 = arith.constant 0 : i32
    return %arg0, %c0_i32 : i32, i32
  }
}

</mosaic_0001>

<bundles_post_ra>
// kernel: tpu_custom_call.1
= control target key start
LH: loop header
LB: loop body
LE: loop exit
PB: predicated region body
PF: predicated region fallthrough
CT: control target
= control target key end

     0   :  { %10 = vsyncpa [#allocation5], 0  ;;  %s303_s15 = smov [#allocation4]   ;;  %s364_s0 = inlined_call_operand.hbm [shape: f32[2,8,32], index: 0, kind: input, shape index: {}]   ;;  %s365_s1 = inlined_call_operand.vmem [shape: s32[2,8], index: 1, kind: input, shape index: {}]   ;;  %s366_s2 = inlined_call_operand.vmem [shape: f32[1,32], index: 2, kind: input, shape index: {}]   ;;  %s367_s3 = inlined_call_operand.<no memory space> [shape: f32[1,1], index: 3, kind: input, shape index: {}]   ;;  %s368_s4 = inlined_call_operand.vmem [shape: f32[2,1], index: 4, kind: output, shape index: {}]  }
   0x1   :  { %s16_s16 = sshll.u32 %s303_s15, 4  ;;  %s279_s19 = scalar_lea.hbm %s364_s0, 256  ;;  %s17_s16 = int_to_ptr.vmem [resolvable:$true] %s16_s16 }
   0x2   :  { %p280_p0 = scmp.ne.s32.totalorder %s364_s0, %s279_s19  ;;  %p283_p1 = scmp.lt.u32.totalorder %s279_s19, %s364_s0 }
   0x4   :  { %p285_p2 = pnand %p283_p1, %p280_p0 }
   0x6   :  { %288 = shalt.err (!%p285_p2)
}
   0x7   :  { %s289_s24 = scalar_lea.vmem %s17_s16, 256  ;;  %p294_p4 = scmp.lt.s32.totalorder %s17_s16, %s17_s16 }
   0x8   :  { %p290_p3 = scmp.ne.s32.totalorder %s17_s16, %s289_s24  ;;  %p295_p5 = scmp.lt.s32.totalorder %s289_s24, %s289_s24 }
   0xa   :  { %p296_p6 = por %p295_p5, %p294_p4 }
   0xc   :  { %p297_p7 = pnand %p296_p6, %p290_p3 }
   0xe   :  { %300 = shalt.err (!%p297_p7)
}
   0xf   :  { %s304_s25 = smov 128   ;;  %s305_s26 = smov 8  }
  0x10   :  { %22 = dma.hbm_to_vmem [thread:$0]  %s364_s0, 256, %s17_s16, [#allocation5], %s304_s25, %s304_s25, %s305_s26  }
  0x11   :  { %301 = dma.done.wait [#allocation5], 256  }
  0x12   :  { %302 = vsyncadd [#allocation5], 4294967040  ;;  %v46_v0 = vlaneseq  ;;  %v306_v1 = vmov 0.0   ;;  %v307_v2 = vmov 1966171168   ;;  %vm308_vm0 = vmmov 0  }
  0x13   :  { %266 = vmatprep.subr.mxu1 %v306_v1  ;;  %261 = vmatprep.subr.mxu0 %v306_v1  ;;  %v44_v3 = vunpack.c.l.s4 %v307_v2  ;;  %v39_v7 = vld [vmem:[#allocation4 + $0x8] sm:$0xff]  ;;  %v38_v8 = vld [vmem:[#allocation4] sm:$0xff]  ;;  %v40_v9 = vld [vmem:[%s365_s1] sm:$0x3]  ;;  %vm225_vm1 = vcmask 58368   ;;  %vm65_vm2 = vcmask 64512   ;;  %v245_v34 = vstv %s367_s3 }
  0x14   :  { %268 = vmatprep.mubr.msk.f32.mxu1 %vm308_vm0, %v306_v1  ;;  %263 = vmatprep.mubr.msk.f32.mxu0 %vm308_vm0, %v306_v1  ;;  %v47_v4 = vshrl.u32 %v46_v0, 7  ;;  %v41_v10 = vcvt.s32.f32 %v40_v9  ;;  %v223_v11 = vld [vmem:[%s365_s1] sm:$0x3]  ;;  %vm36_vm3 = vcmask 254976   ;;  %vm214_vm4 = vcmask 1041409  }
  0x15   :  { %v45_v5 = vunpack.c.0.s8 %v44_v3  ;;  %267 = vmatpush3.msra.mxu1 %v39_v7  ;;  %262 = vmatpush3.msra.mxu0 %v38_v8  ;;  %v224_v12 = vcvt.s32.f32 %v223_v11  ;;  %37 = vst.msk [vmem:[#allocation2] sm:$0x3] %vm36_vm3, %v306_v1  ;;  %v256_v30 = vld [vmem:[%s366_s2] ss:$0 sm:$0xff]  ;;  %vm247_vm5 = vcmask 1024  }
  0x17   :  { %v48_v6 = vsub.s32 %v45_v5, %v47_v4  ;;  %v226_v14 = vsel %vm225_vm1, %v224_v12, 0.0 }
  0x18   :  { %227 = vadd.xlane.f32.xlu0 %v226_v14 }
  0x19   :  { %v49_v13 = vrot.slane %v41_v10, %v48_v6 }
  0x1b   :  { %v50_v15 = vcombine.high %v49_v13, %v49_v13  ;;  %v57_v16 = vrot.slane %v49_v13, %v48_v6 }
  0x1c   :  { %v210_v24 = vld [vmem:[#allocation2] sm:$0x3] }
  0x1d   :  { %v64_v17 = vrot.slane %v50_v15, %v48_v6  ;;  %264 = vmatmul.mubr.msk.f32.vlgmr.msra.gmra.mrb[0].mxu0 %vm65_vm2, %v57_v16 }
  0x1f   :  { %269 = vmatmul.mubr.msk.f32.vlgmr.msra.gmra.mrb[0].mxu1 %vm65_vm2, %v64_v17 }
  0xa5   :  { %v228_v18 = vpop.xlane.xlu0 %227 }
  0xa6   :  { %v229_v19 = vmax.f32 %v228_v18, 1e-09 }
  0xa8   :  { %277 = vrcp.f32 %v229_v19 }
  0xb2   :  { %v278_v28 = vpop.eup %277 }
  0xf0   :  { %v134_v20 = vpop.f32.mrb[0].mxu0 }
  0xf1   :  { %v265_v21 = vpop.f32.mrb[1].mxu0 }
  0xf2   :  { %v206_v22 = vpop.f32.mrb[0].mxu1 }
  0xf3   :  { %v213_v23 = vrot.slane %v206_v22, 7  ;;  %v270_v25 = vpop.f32.mrb[1].mxu1 }
  0xf5   :  { %v215_v26 = vsel %vm214_vm4, %v213_v23, %v134_v20 }
  0xf6   :  { %v217_v27 = vadd.f32 %v215_v26, %v210_v24 }
  0xf8   :  { %219 = vst.msk [vmem:[#allocation2] sm:$0x3] %vm36_vm3, %v217_v27 }
  0xff   :  { %v230_v29 = vld [vmem:[#allocation2] sm:$0x3] }
 0x100   :  { %v232_v31 = vmul.f32 %v278_v28, %v230_v29 }
 0x102   :  { %v240_v32 = vmul.f32 %v256_v30, %v232_v31 }
 0x104   :  { %v241_v33 = vsel %vm36_vm3, %v240_v32, 0.0 }
 0x105   :  { %242 = vadd.xlane.f32.xlu0 %v241_v33 }
 0x192   :  { %v243_v35 = vpop.xlane.xlu0 %242 }
 0x193   :  { %v246_v36 = vadd.f32 %v245_v34, %v243_v35 }
 0x195   :  { %248 = vst.msk [vmem:[%s368_s4] sm:$0x3] %vm247_vm5, %v246_v36 }
 0x196   :  { %253 = vsyncpa [#allocation5], 1 }

</bundles_post_ra>
